<compile_context>
chip_gen: v5e
topology: v5e:2x2
jax: 0.10.0
libtpu: 0.0.40
codegen_flags: <defaults>
</compile_context>

<pallas_src>
import jax
import jax.numpy as jnp
from jax.experimental import pallas as pl
from jax.experimental.pallas import tpu as pltpu

NUM_NETS = 6
COMPUTE_DTYPE = jnp.bfloat16
MIB = 1024 * 1024


# ---------------------------------------------------------------------------
# VMEM model / tile selection
# ---------------------------------------------------------------------------
def _vmem_limit_bytes():
    """Scoped-VMEM limit for this kernel, derived from the actual chip."""
    try:
        cap = int(pltpu.get_tpu_info().vmem_capacity_bytes)
    except Exception:
        cap = 64 * MIB  # v7x per-TensorCore VMEM: the smallest of v5e/v6e/v7x
    # Use at most ~3/4 of physical VMEM (headroom for Mosaic internals):
    # 48 MiB on v7x, 96 MiB on v5e/v6e.
    return min((cap * 3) // 4, 96 * MIB)


def _pick_tm(M, fixed_bytes, per_row_bytes, budget):
    """Largest MXU-friendly row tile whose per-grid-step VMEM fits `budget`.

    fixed_bytes   = VMEM that does not scale with tm (resident/streamed weights, bias)
    per_row_bytes = VMEM per tile row (x + output buffers, real buffer counts)
    Returns None if nothing reasonable fits.
    """
    avail = budget - fixed_bytes
    if avail <= 0 or per_row_bytes <= 0:
        return None
    cap = min(avail // per_row_bytes, M)
    if cap <= 0:
        return None
    # Keep >= 2 row tiles when M allows: the M axis is "parallel" (shards across v7x's
    # two TensorCores) and grid_m == 1 would also disable x/out pipelining.
    if M >= 512:
        cap = min(cap, M // 2)
    cap = min(cap, 1024)  # per-step overhead already amortized beyond this
    # v6e/v7x MXU rows come in 256s (v5e in 128s); fall back to 8-row granularity.
    for mult in (256, 128, 8):
        tm = (cap // mult) * mult
        if tm >= mult:
            return tm
    # Tiny M: a block dim equal to the full array dim is always legal.
    return M if cap >= M else None


# ---------------------------------------------------------------------------
# Kernels
# ---------------------------------------------------------------------------
def _fused_wide_kernel(x_ref, w_ref, b_ref, *out_refs):
    """out_k = x @ W_cat[:, k*H:(k+1)*H] + b[k] for all 6 nets in one wide matmul."""
    h = out_refs[0].shape[-1]
    # bf16 x bf16 -> f32 accumulation on the MXU; bias added in f32.
    y = jnp.dot(x_ref[...], w_ref[...], preferred_element_type=jnp.float32)
    y = y + b_ref[...]
    for k, o_ref in enumerate(out_refs):
        o_ref[...] = y[:, k * h:(k + 1) * h].astype(o_ref.dtype)


def _per_net_kernel(x_ref, w_ref, b_ref, *out_refs):
    """One net per inner grid step: y_j = x @ W_j + b_j, stored only to output j."""
    j = pl.program_id(1)
    y = jnp.dot(x_ref[...], w_ref[0], preferred_element_type=jnp.float32)
    y = y + b_ref[...]
    for k, o_ref in enumerate(out_refs):
        @pl.when(j == k)
        def _store(o_ref=o_ref):
            o_ref[...] = y.astype(o_ref.dtype)


# ---------------------------------------------------------------------------
# Parameter fusion (do ONCE, outside the forward hot path)
# ---------------------------------------------------------------------------
def fuse_params(weights, biases, compute_dtype=COMPUTE_DTYPE):
    """weights: [6, H, H] (y_k = x @ weights[k] + biases[k]), biases: [6, H]
    -> (W_cat [H, 6H] in compute_dtype, b_cat [1, 6H] in f32)."""
    n, h, _ = weights.shape
    assert n == NUM_NETS
    w_cat = jnp.transpose(weights, (1, 0, 2)).reshape(h, NUM_NETS * h)
    b_cat = biases.reshape(1, NUM_NETS * h).astype(jnp.float32)
    return w_cat.astype(compute_dtype), b_cat


# ---------------------------------------------------------------------------
# Forward paths
# ---------------------------------------------------------------------------
def combined_model_forward_fused(x, w_cat, b_cat):
    """Fused path: one wide matmul x2d @ [H, 6H] with resident weights."""
    B, S, H = x.shape
    M = B * S
    N = NUM_NETS * H
    assert w_cat.shape == (H, N) and b_cat.shape == (1, N)

    out_dtype = x.dtype
    in_b = jnp.dtype(w_cat.dtype).itemsize
    out_b = jnp.dtype(out_dtype).itemsize

    limit = _vmem_limit_bytes()
    budget = limit - 2 * MIB
    # Resident (single-buffered) weights + bias; x double-buffered; 6 double-buffered outs.
    fixed_bytes = H * N * in_b + N * 4
    per_row_bytes = 2 * H * in_b + NUM_NETS * 2 * H * out_b
    tm = _pick_tm(M, fixed_bytes, per_row_bytes, budget)
    if tm is None:
        raise ValueError(
            "fused [H, 6H] weight slab does not fit the VMEM budget; use "
            "combined_model_forward(), which falls back to per-net tiling")

    grid_m = pl.cdiv(M, tm)
    x2d = x.reshape(M, H).astype(w_cat.dtype)  # bf16 before the call: halves DMA + VMEM

    cost = pl.CostEstimate(
        flops=2 * M * H * N,
        transcendentals=0,
        bytes_accessed=M * H * in_b + H * N * in_b + N * 4 + NUM_NETS * M * H * out_b,
    )

    def _call(single_buffer_resident):
        # Constant-index operands never change across grid steps -> single-buffer them
        # so the VMEM budget model matches reality.
        resident = {"pipeline_mode": pl.Buffered(1)} if single_buffer_resident else {}
        return pl.pallas_call(
            _fused_wide_kernel,
            out_shape=tuple(
                jax.ShapeDtypeStruct((M, H), out_dtype) for _ in range(NUM_NETS)),
            grid_spec=pltpu.PrefetchScalarGridSpec(
                num_scalar_prefetch=0,
                grid=(grid_m,),
                in_specs=[
                    pl.BlockSpec((tm, H), lambda i: (i, 0)),
                    pl.BlockSpec((H, N), lambda i: (0, 0), **resident),
                    pl.BlockSpec((1, N), lambda i: (0, 0), **resident),
                ],
                out_specs=tuple(
                    pl.BlockSpec((tm, H), lambda i: (i, 0)) for _ in range(NUM_NETS)),
            ),
            compiler_params=pltpu.CompilerParams(
                dimension_semantics=("parallel",),
                vmem_limit_bytes=limit,
            ),
            cost_estimate=cost,
        )(x2d, w_cat, b_cat)

    try:
        outs = _call(True)
    except Exception:
        outs = _call(False)  # fallback if this jax rejects Buffered(1)

    return tuple(o.reshape(B, S, H) for o in outs)


def combined_model_forward_per_net(x, weights, biases):
    """Fallback for large H: grid = (M tiles, 6 nets). The (H, H) weight block for net j
    is streamed per inner step, the x row tile stays resident across the net axis, and
    each of the 6 outputs is written exactly once per row tile."""
    B, S, H = x.shape
    M = B * S
    out_dtype = x.dtype

    w = weights.astype(COMPUTE_DTYPE)               # pre-cast once per call
    b = biases.reshape(NUM_NETS, H).astype(jnp.float32)

    in_b = jnp.dtype(COMPUTE_DTYPE).itemsize
    out_b = jnp.dtype(out_dtype).itemsize

    limit = _vmem_limit_bytes()
    budget = limit - 2 * MIB
    fixed_bytes = 2 * H * H * in_b + 2 * H * 4       # streamed (1,H,H) W + (1,H) bias, 2 bufs
    per_row_bytes = 2 * H * in_b + NUM_NETS * 2 * H * out_b
    tm = _pick_tm(M, fixed_bytes, per_row_bytes, budget)
    if tm is None:
        # TODO(synk): add K/N tiling inside a single net for H so large that even one
        # (H, H) weight block exceeds the VMEM budget.
        raise ValueError("H too large for the per-net fallback tiling")

    grid = (pl.cdiv(M, tm), NUM_NETS)
    x2d = x.reshape(M, H).astype(COMPUTE_DTYPE)

    cost = pl.CostEstimate(
        flops=2 * M * H * NUM_NETS * H,
        transcendentals=0,
        bytes_accessed=(grid[0] * NUM_NETS * H * H * in_b    # W re-read per M tile
                        + M * H * in_b + NUM_NETS * H * 4
                        + NUM_NETS * M * H * out_b),
    )

    outs = pl.pallas_call(
        _per_net_kernel,
        out_shape=tuple(
            jax.ShapeDtypeStruct((M, H), out_dtype) for _ in range(NUM_NETS)),
        grid_spec=pltpu.PrefetchScalarGridSpec(
            num_scalar_prefetch=0,
            grid=grid,
            in_specs=[
                pl.BlockSpec((tm, H), lambda i, j: (i, 0)),       # resident across nets
                pl.BlockSpec((1, H, H), lambda i, j: (j, 0, 0)),  # streamed per net
                pl.BlockSpec((1, H), lambda i, j: (j, 0)),
            ],
            out_specs=tuple(
                pl.BlockSpec((tm, H), lambda i, j: (i, 0)) for _ in range(NUM_NETS)),
        ),
        compiler_params=pltpu.CompilerParams(
            # outputs are resident across the net axis -> it must be "arbitrary"
            dimension_semantics=("parallel", "arbitrary"),
            vmem_limit_bytes=limit,
        ),
        cost_estimate=cost,
    )(x2d, w, b)

    return tuple(o.reshape(B, S, H) for o in outs)


def combined_model_forward(x, weights, biases, *, force_per_net=False):
    """CombinedModel.forward: returns (net1(x), ..., net6(x)).

    Picks the fused-wide-matmul path when the concatenated [H, 6H] weight slab fits the
    chip's VMEM budget, otherwise tiles over the 6 nets.  For repeated calls, pre-fuse
    once with `fuse_params` and call `combined_model_forward_fused` directly (avoids a
    per-call HBM transpose/cast of the weights).
    """
    B, S, H = x.shape
    M = B * S
    N = NUM_NETS * H
    in_b = jnp.dtype(COMPUTE_DTYPE).itemsize
    out_b = jnp.dtype(x.dtype).itemsize
    limit = _vmem_limit_bytes()
    budget = limit - 2 * MIB
    fixed_bytes = H * N * in_b + N * 4
    per_row_bytes = 2 * H * in_b + NUM_NETS * 2 * H * out_b
    use_fused = (not force_per_net) and (
        _pick_tm(M, fixed_bytes, per_row_bytes, budget) is not None)
    if use_fused:
        w_cat, b_cat = fuse_params(weights, biases)
        return combined_model_forward_fused(x, w_cat, b_cat)
    return combined_model_forward_per_net(x, weights, biases)


def reference_forward(x, weights, biases):
    B, S, H = x.shape
    x2d = x.reshape(B * S, H)
    return tuple(
        (x2d @ weights[i] + biases[i]).reshape(B, S, H) for i in range(NUM_NETS))


if __name__ == "__main__":
    key = jax.random.PRNGKey(0)
    B, S, H = 2, 8, 32

    kx, kw, kb = jax.random.split(key, 3)
    x = jax.random.normal(kx, (B, S, H), dtype=jnp.float32)
    # Deterministic synthetic parameters for the 6 linear "nets".
    weights = jax.random.normal(kw, (NUM_NETS, H, H), dtype=jnp.float32) * (1.0 / H ** 0.5)
    biases = jax.random.normal(kb, (NUM_NETS, H), dtype=jnp.float32) * 0.1

    refs = reference_forward(x, weights, biases)

    # Fused path (the common case): parameters fused ONCE, outside the hot path.
    w_cat, b_cat = fuse_params(weights, biases)
    outs = jax.block_until_ready(combined_model_forward_fused(x, w_cat, b_cat))
    for o, r in zip(outs, refs):
        assert o.shape == (B, S, H)
        assert jnp.allclose(o, r, atol=3e-2, rtol=3e-2), float(jnp.max(jnp.abs(o - r)))

    # Per-net (N-tiled) fallback path, forced here for coverage at small shapes.
    outs_b = jax.block_until_ready(
        combined_model_forward(x, weights, biases, force_per_net=True))
    for o, r in zip(outs_b, refs):
        assert o.shape == (B, S, H)
        assert jnp.allclose(o, r, atol=3e-2, rtol=3e-2), float(jnp.max(jnp.abs(o - r)))

    print("KERNEL_OK")
</pallas_src>

<mosaic_0001>
module attributes {stable_mosaic.version = 11 : i64} {
  func.func @_fused_wide_kernel(%arg0: i32, %arg1: memref<16x32xbf16, #tpu.memory_space<vmem>>, %arg2: memref<32x192xbf16, #tpu.memory_space<vmem>>, %arg3: memref<1x192xf32, #tpu.memory_space<vmem>>, %arg4: memref<16x32xf32, #tpu.memory_space<vmem>>, %arg5: memref<16x32xf32, #tpu.memory_space<vmem>>, %arg6: memref<16x32xf32, #tpu.memory_space<vmem>>, %arg7: memref<16x32xf32, #tpu.memory_space<vmem>>, %arg8: memref<16x32xf32, #tpu.memory_space<vmem>>, %arg9: memref<16x32xf32, #tpu.memory_space<vmem>>) attributes {dimension_semantics = [#tpu.dimension_semantics<parallel>], iteration_bounds = array<i64: 1>, scalar_prefetch = 0 : i64, scratch_operands = 0 : i64, tpu.core_type = #tpu.core_type<tc>, window_params = [{transform_indices = @transform_0, window_bounds = array<i64: 16, 32>}, {pipeline_mode = #tpu.pipeline_mode<synchronous>, transform_indices = @transform_1, window_bounds = array<i64: 32, 192>}, {pipeline_mode = #tpu.pipeline_mode<synchronous>, transform_indices = @transform_2, window_bounds = array<i64: 1, 192>}, {transform_indices = @transform_3, window_bounds = array<i64: 16, 32>}, {transform_indices = @transform_4, window_bounds = array<i64: 16, 32>}, {transform_indices = @transform_5, window_bounds = array<i64: 16, 32>}, {transform_indices = @transform_6, window_bounds = array<i64: 16, 32>}, {transform_indices = @transform_7, window_bounds = array<i64: 16, 32>}, {transform_indices = @transform_8, window_bounds = array<i64: 16, 32>}]} {
    %c0 = arith.constant 0 : index
    %c0_0 = arith.constant 0 : index
    %0 = vector.load %arg1[%c0, %c0_0] : memref<16x32xbf16, #tpu.memory_space<vmem>>, vector<16x32xbf16>
    %c0_1 = arith.constant 0 : index
    %c0_2 = arith.constant 0 : index
    %1 = vector.load %arg2[%c0_1, %c0_2] : memref<32x192xbf16, #tpu.memory_space<vmem>>, vector<32x192xbf16>
    %cst = arith.constant dense<0.000000e+00> : vector<16x192xf32>
    %2 = tpu.matmul %0, %1, %cst {dimension_numbers = #tpu.dot_dimension_numbers<[1], [0], [0], [1], [0, 0, 1, 1], [], []>} : vector<16x32xbf16>, vector<32x192xbf16>, vector<16x192xf32> -> vector<16x192xf32>
    %c0_3 = arith.constant 0 : index
    %c0_4 = arith.constant 0 : index
    %3 = vector.load %arg3[%c0_3, %c0_4] : memref<1x192xf32, #tpu.memory_space<vmem>>, vector<1x192xf32>
    %4 = vector.broadcast %3 : vector<1x192xf32> to vector<16x192xf32>
    %5 = arith.addf %2, %4 : vector<16x192xf32>
    %6 = vector.extract_strided_slice %5 {offsets = [0, 0], sizes = [16, 32], strides = [1, 1]} : vector<16x192xf32> to vector<16x32xf32>
    %c0_5 = arith.constant 0 : index
    %c0_6 = arith.constant 0 : index
    %7 = vector.load %arg4[%c0_5, %c0_6] : memref<16x32xf32, #tpu.memory_space<vmem>>, vector<16x32xf32>
    tpu.vector_store %arg4[%c0_5, %c0_6], %6 {strides = array<i32>} : memref<16x32xf32, #tpu.memory_space<vmem>>, vector<16x32xf32>,
    %8 = vector.extract_strided_slice %5 {offsets = [0, 32], sizes = [16, 32], strides = [1, 1]} : vector<16x192xf32> to vector<16x32xf32>
    %c0_7 = arith.constant 0 : index
    %c0_8 = arith.constant 0 : index
    %9 = vector.load %arg5[%c0_7, %c0_8] : memref<16x32xf32, #tpu.memory_space<vmem>>, vector<16x32xf32>
    tpu.vector_store %arg5[%c0_7, %c0_8], %8 {strides = array<i32>} : memref<16x32xf32, #tpu.memory_space<vmem>>, vector<16x32xf32>,
    %10 = vector.extract_strided_slice %5 {offsets = [0, 64], sizes = [16, 32], strides = [1, 1]} : vector<16x192xf32> to vector<16x32xf32>
    %c0_9 = arith.constant 0 : index
    %c0_10 = arith.constant 0 : index
    %11 = vector.load %arg6[%c0_9, %c0_10] : memref<16x32xf32, #tpu.memory_space<vmem>>, vector<16x32xf32>
    tpu.vector_store %arg6[%c0_9, %c0_10], %10 {strides = array<i32>} : memref<16x32xf32, #tpu.memory_space<vmem>>, vector<16x32xf32>,
    %12 = vector.extract_strided_slice %5 {offsets = [0, 96], sizes = [16, 32], strides = [1, 1]} : vector<16x192xf32> to vector<16x32xf32>
    %c0_11 = arith.constant 0 : index
    %c0_12 = arith.constant 0 : index
    %13 = vector.load %arg7[%c0_11, %c0_12] : memref<16x32xf32, #tpu.memory_space<vmem>>, vector<16x32xf32>
    tpu.vector_store %arg7[%c0_11, %c0_12], %12 {strides = array<i32>} : memref<16x32xf32, #tpu.memory_space<vmem>>, vector<16x32xf32>,
    %14 = vector.extract_strided_slice %5 {offsets = [0, 128], sizes = [16, 32], strides = [1, 1]} : vector<16x192xf32> to vector<16x32xf32>
    %c0_13 = arith.constant 0 : index
    %c0_14 = arith.constant 0 : index
    %15 = vector.load %arg8[%c0_13, %c0_14] : memref<16x32xf32, #tpu.memory_space<vmem>>, vector<16x32xf32>
    tpu.vector_store %arg8[%c0_13, %c0_14], %14 {strides = array<i32>} : memref<16x32xf32, #tpu.memory_space<vmem>>, vector<16x32xf32>,
    %16 = vector.extract_strided_slice %5 {offsets = [0, 160], sizes = [16, 32], strides = [1, 1]} : vector<16x192xf32> to vector<16x32xf32>
    %c0_15 = arith.constant 0 : index
    %c0_16 = arith.constant 0 : index
    %17 = vector.load %arg9[%c0_15, %c0_16] : memref<16x32xf32, #tpu.memory_space<vmem>>, vector<16x32xf32>
    tpu.vector_store %arg9[%c0_15, %c0_16], %16 {strides = array<i32>} : memref<16x32xf32, #tpu.memory_space<vmem>>, vector<16x32xf32>,
    return
  }
  func.func @transform_0(%arg0: i32) -> (i32, i32) {
    %c0_i32 = arith.constant 0 : i32
    %c0_i32_0 = arith.constant 0 : i32
    return %arg0, %c0_i32 : i32, i32
  }
  func.func @transform_1(%arg0: i32) -> (i32, i32) {
    %c0_i32 = arith.constant 0 : i32
    %c0_i32_0 = arith.constant 0 : i32
    %c0_i32_1 = arith.constant 0 : i32
    return %c0_i32, %c0_i32_0 : i32, i32
  }
  func.func @transform_2(%arg0: i32) -> (i32, i32) {
    %c0_i32 = arith.constant 0 : i32
    %c0_i32_0 = arith.constant 0 : i32
    %c0_i32_1 = arith.constant 0 : i32
    return %c0_i32, %c0_i32_0 : i32, i32
  }
  func.func @transform_3(%arg0: i32) -> (i32, i32) {
    %c0_i32 = arith.constant 0 : i32
    %c0_i32_0 = arith.constant 0 : i32
    return %arg0, %c0_i32 : i32, i32
  }
  func.func @transform_4(%arg0: i32) -> (i32, i32) {
    %c0_i32 = arith.constant 0 : i32
    %c0_i32_0 = arith.constant 0 : i32
    return %arg0, %c0_i32 : i32, i32
  }
  func.func @transform_5(%arg0: i32) -> (i32, i32) {
    %c0_i32 = arith.constant 0 : i32
    %c0_i32_0 = arith.constant 0 : i32
    return %arg0, %c0_i32 : i32, i32
  }
  func.func @transform_6(%arg0: i32) -> (i32, i32) {
    %c0_i32 = arith.constant 0 : i32
    %c0_i32_0 = arith.constant 0 : i32
    return %arg0, %c0_i32 : i32, i32
  }
  func.func @transform_7(%arg0: i32) -> (i32, i32) {
    %c0_i32 = arith.constant 0 : i32
    %c0_i32_0 = arith.constant 0 : i32
    return %arg0, %c0_i32 : i32, i32
  }
  func.func @transform_8(%arg0: i32) -> (i32, i32) {
    %c0_i32 = arith.constant 0 : i32
    %c0_i32_0 = arith.constant 0 : i32
    return %arg0, %c0_i32 : i32, i32
  }
}

module attributes {stable_mosaic.version = 11 : i64} {
  func.func @_fused_wide_kernel(%arg0: i32, %arg1: memref<16x32xbf16, #tpu.memory_space<vmem>>, %arg2: memref<32x192xbf16, #tpu.memory_space<vmem>>, %arg3: memref<1x192xf32, #tpu.memory_space<vmem>>, %arg4: memref<16x32xf32, #tpu.memory_space<vmem>>, %arg5: memref<16x32xf32, #tpu.memory_space<vmem>>, %arg6: memref<16x32xf32, #tpu.memory_space<vmem>>, %arg7: memref<16x32xf32, #tpu.memory_space<vmem>>, %arg8: memref<16x32xf32, #tpu.memory_space<vmem>>, %arg9: memref<16x32xf32, #tpu.memory_space<vmem>>) attributes {dimension_semantics = [#tpu.dimension_semantics<parallel>], iteration_bounds = array<i64: 1>, scalar_prefetch = 0 : i64, scratch_operands = 0 : i64, tpu.core_type = #tpu.core_type<tc>, window_params = [{transform_indices = @transform_0, window_bounds = array<i64: 16, 32>}, {pipeline_mode = #tpu.pipeline_mode<synchronous>, transform_indices = @transform_1, window_bounds = array<i64: 32, 192>}, {pipeline_mode = #tpu.pipeline_mode<synchronous>, transform_indices = @transform_2, window_bounds = array<i64: 1, 192>}, {transform_indices = @transform_3, window_bounds = array<i64: 16, 32>}, {transform_indices = @transform_4, window_bounds = array<i64: 16, 32>}, {transform_indices = @transform_5, window_bounds = array<i64: 16, 32>}, {transform_indices = @transform_6, window_bounds = array<i64: 16, 32>}, {transform_indices = @transform_7, window_bounds = array<i64: 16, 32>}, {transform_indices = @transform_8, window_bounds = array<i64: 16, 32>}]} {
    %c0 = arith.constant 0 : index
    %c0_0 = arith.constant 0 : index
    %0 = vector.load %arg1[%c0, %c0_0] : memref<16x32xbf16, #tpu.memory_space<vmem>>, vector<16x32xbf16>
    %c0_1 = arith.constant 0 : index
    %c0_2 = arith.constant 0 : index
    %1 = vector.load %arg2[%c0_1, %c0_2] : memref<32x192xbf16, #tpu.memory_space<vmem>>, vector<32x192xbf16>
    %cst = arith.constant dense<0.000000e+00> : vector<16x192xf32>
    %2 = tpu.matmul %0, %1, %cst {dimension_numbers = #tpu.dot_dimension_numbers<[1], [0], [0], [1], [0, 0, 1, 1], [], []>} : vector<16x32xbf16>, vector<32x192xbf16>, vector<16x192xf32> -> vector<16x192xf32>
    %c0_3 = arith.constant 0 : index
    %c0_4 = arith.constant 0 : index
    %3 = vector.load %arg3[%c0_3, %c0_4] : memref<1x192xf32, #tpu.memory_space<vmem>>, vector<1x192xf32>
    %4 = vector.broadcast %3 : vector<1x192xf32> to vector<16x192xf32>
    %5 = arith.addf %2, %4 : vector<16x192xf32>
    %6 = vector.extract_strided_slice %5 {offsets = [0, 0], sizes = [16, 32], strides = [1, 1]} : vector<16x192xf32> to vector<16x32xf32>
    %c0_5 = arith.constant 0 : index
    %c0_6 = arith.constant 0 : index
    %7 = vector.load %arg4[%c0_5, %c0_6] : memref<16x32xf32, #tpu.memory_space<vmem>>, vector<16x32xf32>
    tpu.vector_store %arg4[%c0_5, %c0_6], %6 {strides = array<i32>} : memref<16x32xf32, #tpu.memory_space<vmem>>, vector<16x32xf32>,
    %8 = vector.extract_strided_slice %5 {offsets = [0, 32], sizes = [16, 32], strides = [1, 1]} : vector<16x192xf32> to vector<16x32xf32>
    %c0_7 = arith.constant 0 : index
    %c0_8 = arith.constant 0 : index
    %9 = vector.load %arg5[%c0_7, %c0_8] : memref<16x32xf32, #tpu.memory_space<vmem>>, vector<16x32xf32>
    tpu.vector_store %arg5[%c0_7, %c0_8], %8 {strides = array<i32>} : memref<16x32xf32, #tpu.memory_space<vmem>>, vector<16x32xf32>,
    %10 = vector.extract_strided_slice %5 {offsets = [0, 64], sizes = [16, 32], strides = [1, 1]} : vector<16x192xf32> to vector<16x32xf32>
    %c0_9 = arith.constant 0 : index
    %c0_10 = arith.constant 0 : index
    %11 = vector.load %arg6[%c0_9, %c0_10] : memref<16x32xf32, #tpu.memory_space<vmem>>, vector<16x32xf32>
    tpu.vector_store %arg6[%c0_9, %c0_10], %10 {strides = array<i32>} : memref<16x32xf32, #tpu.memory_space<vmem>>, vector<16x32xf32>,
    %12 = vector.extract_strided_slice %5 {offsets = [0, 96], sizes = [16, 32], strides = [1, 1]} : vector<16x192xf32> to vector<16x32xf32>
    %c0_11 = arith.constant 0 : index
    %c0_12 = arith.constant 0 : index
    %13 = vector.load %arg7[%c0_11, %c0_12] : memref<16x32xf32, #tpu.memory_space<vmem>>, vector<16x32xf32>
    tpu.vector_store %arg7[%c0_11, %c0_12], %12 {strides = array<i32>} : memref<16x32xf32, #tpu.memory_space<vmem>>, vector<16x32xf32>,
    %14 = vector.extract_strided_slice %5 {offsets = [0, 128], sizes = [16, 32], strides = [1, 1]} : vector<16x192xf32> to vector<16x32xf32>
    %c0_13 = arith.constant 0 : index
    %c0_14 = arith.constant 0 : index
    %15 = vector.load %arg8[%c0_13, %c0_14] : memref<16x32xf32, #tpu.memory_space<vmem>>, vector<16x32xf32>
    tpu.vector_store %arg8[%c0_13, %c0_14], %14 {strides = array<i32>} : memref<16x32xf32, #tpu.memory_space<vmem>>, vector<16x32xf32>,
    %16 = vector.extract_strided_slice %5 {offsets = [0, 160], sizes = [16, 32], strides = [1, 1]} : vector<16x192xf32> to vector<16x32xf32>
    %c0_15 = arith.constant 0 : index
    %c0_16 = arith.constant 0 : index
    %17 = vector.load %arg9[%c0_15, %c0_16] : memref<16x32xf32, #tpu.memory_space<vmem>>, vector<16x32xf32>
    tpu.vector_store %arg9[%c0_15, %c0_16], %16 {strides = array<i32>} : memref<16x32xf32, #tpu.memory_space<vmem>>, vector<16x32xf32>,
    return
  }
  func.func @transform_0(%arg0: i32) -> (i32, i32) {
    %c0_i32 = arith.constant 0 : i32
    %c0_i32_0 = arith.constant 0 : i32
    return %arg0, %c0_i32 : i32, i32
  }
  func.func @transform_1(%arg0: i32) -> (i32, i32) {
    %c0_i32 = arith.constant 0 : i32
    %c0_i32_0 = arith.constant 0 : i32
    %c0_i32_1 = arith.constant 0 : i32
    return %c0_i32, %c0_i32_0 : i32, i32
  }
  func.func @transform_2(%arg0: i32) -> (i32, i32) {
    %c0_i32 = arith.constant 0 : i32
    %c0_i32_0 = arith.constant 0 : i32
    %c0_i32_1 = arith.constant 0 : i32
    return %c0_i32, %c0_i32_0 : i32, i32
  }
  func.func @transform_3(%arg0: i32) -> (i32, i32) {
    %c0_i32 = arith.constant 0 : i32
    %c0_i32_0 = arith.constant 0 : i32
    return %arg0, %c0_i32 : i32, i32
  }
  func.func @transform_4(%arg0: i32) -> (i32, i32) {
    %c0_i32 = arith.constant 0 : i32
    %c0_i32_0 = arith.constant 0 : i32
    return %arg0, %c0_i32 : i32, i32
  }
  func.func @transform_5(%arg0: i32) -> (i32, i32) {
    %c0_i32 = arith.constant 0 : i32
    %c0_i32_0 = arith.constant 0 : i32
    return %arg0, %c0_i32 : i32, i32
  }
  func.func @transform_6(%arg0: i32) -> (i32, i32) {
    %c0_i32 = arith.constant 0 : i32
    %c0_i32_0 = arith.constant 0 : i32
    return %arg0, %c0_i32 : i32, i32
  }
  func.func @transform_7(%arg0: i32) -> (i32, i32) {
    %c0_i32 = arith.constant 0 : i32
    %c0_i32_0 = arith.constant 0 : i32
    return %arg0, %c0_i32 : i32, i32
  }
  func.func @transform_8(%arg0: i32) -> (i32, i32) {
    %c0_i32 = arith.constant 0 : i32
    %c0_i32_0 = arith.constant 0 : i32
    return %arg0, %c0_i32 : i32, i32
  }
}

</mosaic_0001>

<bundles_post_ra>
// kernel: tpu_custom_call.1
= control target key start
LH: loop header
LB: loop body
LE: loop exit
PB: predicated region body
PF: predicated region fallthrough
CT: control target
= control target key end

     0   :  { %14 = vsyncpa [#allocation3], 0  ;;  %s689_s0 = inlined_call_operand.hbm [shape: bf16[16,32], index: 0, kind: input, shape index: {}]   ;;  %s690_s1 = inlined_call_operand.hbm [shape: bf16[32,192], index: 1, kind: input, shape index: {}]   ;;  %s691_s2 = inlined_call_operand.hbm [shape: f32[1,192], index: 2, kind: input, shape index: {}]   ;;  %s692_s3 = inlined_call_operand.hbm [shape: f32[16,32], index: 3, kind: output, shape index: {0}]   ;;  %s693_s4 = inlined_call_operand.hbm [shape: f32[16,32], index: 4, kind: output, shape index: {1}]   ;;  %s694_s5 = inlined_call_operand.hbm [shape: f32[16,32], index: 5, kind: output, shape index: {2}]   ;;  %s695_s6 = inlined_call_operand.hbm [shape: f32[16,32], index: 6, kind: output, shape index: {3}]   ;;  %s696_s7 = inlined_call_operand.hbm [shape: f32[16,32], index: 7, kind: output, shape index: {4}]   ;;  %s697_s8 = inlined_call_operand.hbm [shape: f32[16,32], index: 8, kind: output, shape index: {5}]  }
   0x1   :  { %15 = vsyncpa [#allocation6], 0 }
   0x2   :  { %16 = vsyncpa [#allocation4], 0 }
   0x3   :  { %17 = vsyncpa [#allocation10], 0 }
   0x4   :  { %18 = vsyncpa [#allocation13], 0  ;;  %s37_s29 = sshll.u32 %s690_s1, 4  ;;  %s38_s29 = int_to_ptr.hbm [resolvable:$true] %s37_s29 }
   0x5   :  { %19 = vsyncpa [#allocation16], 0  ;;  %s557_s30 = smov [#allocation5]   ;;  %s24_s12 = sshll.u32 %s689_s0, 4  ;;  %s25_s12 = int_to_ptr.hbm [resolvable:$true] %s24_s12 }
   0x6   :  { %s39_s9 = sshll.u32 %s557_s30, 4  ;;  %s558_s13 = smov 128   ;;  %s40_s9 = int_to_ptr.vmem [resolvable:$true] %s39_s9 }
   0x7   :  { %s559_s14 = smov 8   ;;  %s560_s15 = smov [#allocation2]  }
   0x8   :  { %45 = dma.hbm_to_vmem [thread:$0]  %s38_s29, 512, %s40_s9, [#allocation6], %s558_s13, %s558_s13, %s559_s14  }
   0x9   :  { %s26_s16 = sshll.u32 %s560_s15, 4  ;;  %s561_s1 = smov 64   ;;  %s27_s16 = int_to_ptr.vmem [resolvable:$true] %s26_s16 }
   0xa   :  { %s562_s17 = smov 4   ;;  %s51_s20 = sshll.u32 %s691_s2, 4  ;;  %s52_s20 = int_to_ptr.hbm [resolvable:$true] %s51_s20 }
   0xb   :  { %32 = dma.hbm_to_vmem [thread:$0]  %s25_s12, 128, %s27_s16, [#allocation3], %s561_s1, %s561_s1, %s562_s17  }
   0xc   :  { %s563_s0 = smov [#allocation7]  }
   0xd   :  { %s53_s21 = sshll.u32 %s563_s0, 4  ;;  %s54_s21 = int_to_ptr.vmem [resolvable:$true] %s53_s21 }
   0xe   :  { %56 = dma.hbm_to_vmem [thread:$0]  %s52_s20, 32, %s54_s21, [#allocation6]  }
   0xf   :  { %545 = dma.done.wait [#allocation3], 128  }
  0x10   :  { %546 = vsyncadd [#allocation3], 4294967168 }
  0x11   :  { %547 = dma.done.wait [#allocation6], 544  }
  0x12   :  { %548 = vsyncadd [#allocation6], 4294966752  ;;  %v301_v0 = vld [vmem:[#allocation5 + $0x10] sm:$0xf]  ;;  %v313_v1 = vld [vmem:[#allocation5 + $0x14] sm:$0xf0] }
  0x13   :  { %v312_v2 = vld [vmem:[#allocation5 + $0x14] sm:$0xf]  ;;  %v302_v3 = vor.u32 %v313_v1, %v301_v0  ;;  %v303_v4 = vld [vmem:[#allocation5 + $0x18] sm:$0xf0]  ;;  %v293_v5 = vld [vmem:[#allocation5] sm:$0xf] }
  0x14   :  { %v311_v6 = vld [vmem:[#allocation5 + $0x4] sm:$0xf0]  ;;  %v306_v7 = vor.u32 %v312_v2, %v303_v4  ;;  %v310_v8 = vld [vmem:[#allocation5 + $0x4] sm:$0xf]  ;;  %v295_v9 = vld [vmem:[#allocation5 + $0x8] sm:$0xf0] }
  0x15   :  { %117 = vmatpush.bf16.msra.mxu0 %v302_v3  ;;  %v294_v10 = vor.u32 %v311_v6, %v293_v5  ;;  %v298_v11 = vor.u32 %v310_v8, %v295_v9  ;;  %v309_v12 = vld [vmem:[#allocation2] sm:$0xff]  ;;  %vm107_vm0 = vcmask 261120   ;;  %v76_v13 = vld [vmem:[#allocation7] sm:$0x3]  ;;  %s564_s2 = smov 32   ;;  %s565_s22 = smov 96  }
  0x16   :  { %131 = vmatpush.bf16.msra.mxu1 %v306_v7  ;;  %v78_v14 = vperm.slane %v76_v13, 0  ;;  %v79_v15 = vperm.slane %v76_v13, 1  ;;  %s185_s25 = sshll.u32 %s692_s3, 4  ;;  %s566_s26 = smov [#allocation8]   ;;  %s186_s25 = int_to_ptr.hbm [resolvable:$true] %s185_s25 }
  0x17   :  { %s183_s27 = sshll.u32 %s566_s26, 4  ;;  %s567_s3 = smov [#allocation9]   ;;  %s184_s27 = int_to_ptr.vmem [resolvable:$true] %s183_s27 }
  0x18   :  { %s647_s28 = sshll.u32 %s567_s3, 4  ;;  %s198_s9 = sshll.u32 %s693_s4, 4  ;;  %s197_s28 = int_to_ptr.vmem [resolvable:$true] %s647_s28  ;;  %s199_s9 = int_to_ptr.hbm [resolvable:$true] %s198_s9 }
  0x19   :  { %118 = vmatpush.bf16.msra.mxu0 %v294_v10  ;;  %s568_s10 = smov [#allocation12]   ;;  %s224_s16 = sshll.u32 %s695_s6, 4  ;;  %s225_s16 = int_to_ptr.hbm [resolvable:$true] %s224_s16 }
  0x1a   :  { %132 = vmatpush.bf16.msra.mxu1 %v298_v11  ;;  %s652_s11 = sshll.u32 %s568_s10, 4  ;;  %s211_s19 = sshll.u32 %s694_s5, 4  ;;  %s223_s11 = int_to_ptr.vmem [resolvable:$true] %s652_s11  ;;  %s212_s19 = int_to_ptr.hbm [resolvable:$true] %s211_s19 }
  0x1b   :  { %s570_s20 = smov [#allocation14]   ;;  %s571_s6 = smov [#allocation15]  }
  0x1c   :  { %307 = vmatmul.msk.bf16.vlgmr.msra.gmra.mxu0 %vm107_vm0, %v309_v12  ;;  %s235_s0 = sshll.u32 %s570_s20, 4  ;;  %s248_s23 = sshll.u32 %s571_s6, 4  ;;  %s236_s0 = int_to_ptr.vmem [resolvable:$true] %s235_s0  ;;  %s249_s23 = int_to_ptr.vmem [resolvable:$true] %s248_s23 }
  0x1d   :  { %308 = vmatmul.msk.bf16.vlgmr.msra.gmra.mxu1 %vm107_vm0, %v309_v12  ;;  %s250_s5 = sshll.u32 %s697_s8, 4  ;;  %s251_s5 = int_to_ptr.hbm [resolvable:$true] %s250_s5 }
  0x99   :  { %v120_v16 = vpop.f32.mrf.mxu0 }
  0x9a   :  { %v121_v17 = vadd.f32 %v120_v16, %v78_v14  ;;  %v134_v18 = vpop.f32.mrf.mxu1 }
  0x9b   :  { %v135_v19 = vadd.f32 %v134_v18, %v79_v15 }
  0x9c   :  { %139 = vst.msk [vmem:[#allocation8] sm:$0xff] %vm107_vm0, %v121_v17  ;;  %151 = vrot.lane.b32.xlu2 %v121_v17, %s561_s1  ;;  %159 = vrot.lane.b32.xlu1 %v121_v17, %s564_s2 }
  0x9d   :  { %167 = vst.msk [vmem:[#allocation14] sm:$0xff] %vm107_vm0, %v135_v19  ;;  %143 = vrot.lane.b32.xlu0 %v121_v17, %s565_s22 }
  0xa1   :  { %v122_v20 = vpop.f32.mrf.mxu0 }
  0xa2   :  { %v123_v21 = vadd.f32 %v122_v20, %v78_v14  ;;  %v136_v22 = vpop.f32.mrf.mxu1 }
  0xa3   :  { %v137_v23 = vadd.f32 %v136_v22, %v79_v15 }
  0xa4   :  { %140 = vst.msk [vmem:[#allocation8 + $0x8] sm:$0xff] %vm107_vm0, %v123_v21  ;;  %153 = vrot.lane.b32.xlu2 %v123_v21, %s561_s1  ;;  %161 = vrot.lane.b32.xlu1 %v123_v21, %s564_s2  ;;  %s569_s1 = smov [#allocation11]  }
  0xa5   :  { %168 = vst.msk [vmem:[#allocation14 + $0x8] sm:$0xff] %vm107_vm0, %v137_v23  ;;  %145 = vrot.lane.b32.xlu0 %v123_v21, %s565_s22  ;;  %s209_s17 = sshll.u32 %s569_s1, 4  ;;  %s210_s17 = int_to_ptr.vmem [resolvable:$true] %s209_s17 }
  0xa6   :  { %191 = dma.vmem_to_hbm [thread:$0]  %s184_s27, 256, %s186_s25, [#allocation4], %s558_s13, %s558_s13, %s559_s14  }
  0xac   :  { %173 = vrot.lane.b32.xlu1 %v137_v23, %s565_s22 }
  0xad   :  { %171 = vrot.lane.b32.xlu0 %v135_v19, %s565_s22  ;;  %s237_s22 = sshll.u32 %s696_s7, 4  ;;  %s238_s22 = int_to_ptr.hbm [resolvable:$true] %s237_s22 }
  0xf6   :  { %v152_v24 = vpop.permute.xlu2 %151 }
  0xf7   :  { %157 = vst.msk [vmem:[#allocation11] sm:$0xff] %vm107_vm0, %v152_v24 }
  0xfe   :  { %v154_v25 = vpop.permute.xlu2 %153 }
  0xff   :  { %158 = vst.msk [vmem:[#allocation11 + $0x8] sm:$0xff] %vm107_vm0, %v154_v25 }
 0x10e   :  { %v160_v26 = vpop.permute.xlu1 %159 }
 0x10f   :  { %165 = vst.msk [vmem:[#allocation12] sm:$0xff] %vm107_vm0, %v160_v26  ;;  %v144_v27 = vpop.permute.xlu0 %143 }
 0x110   :  { %149 = vst.msk [vmem:[#allocation9] sm:$0xff] %vm107_vm0, %v144_v27 }
 0x116   :  { %v162_v28 = vpop.permute.xlu1 %161 }
 0x117   :  { %166 = vst.msk [vmem:[#allocation12 + $0x8] sm:$0xff] %vm107_vm0, %v162_v28  ;;  %v146_v29 = vpop.permute.xlu0 %145 }
 0x118   :  { %150 = vst.msk [vmem:[#allocation9 + $0x8] sm:$0xff] %vm107_vm0, %v146_v29  ;;  %230 = dma.vmem_to_hbm [thread:$0]  %s223_s11, 256, %s225_s16, [#allocation13], %s558_s13, %s558_s13, %s559_s14  }
 0x119   :  { %204 = dma.vmem_to_hbm [thread:$0]  %s197_s28, 256, %s199_s9, [#allocation10], %s558_s13, %s558_s13, %s559_s14  }
 0x11a   :  { %217 = dma.vmem_to_hbm [thread:$0]  %s210_s17, 256, %s212_s19, [#allocation10], %s558_s13, %s558_s13, %s559_s14  }
 0x11b   :  { %243 = dma.vmem_to_hbm [thread:$0]  %s236_s0, 256, %s238_s22, [#allocation13], %s558_s13, %s558_s13, %s559_s14  }
 0x11e   :  { %v174_v30 = vpop.permute.xlu1 %173 }
 0x11f   :  { %178 = vst.msk [vmem:[#allocation15 + $0x8] sm:$0xff] %vm107_vm0, %v174_v30  ;;  %v172_v31 = vpop.permute.xlu0 %171 }
 0x120   :  { %177 = vst.msk [vmem:[#allocation15] sm:$0xff] %vm107_vm0, %v172_v31 }
 0x121   :  { %256 = dma.vmem_to_hbm [thread:$0]  %s249_s23, 256, %s251_s5, [#allocation16], %s558_s13, %s558_s13, %s559_s14  }
 0x122   :  { %549 = dma.done.wait [#allocation4], 256  }
 0x123   :  { %550 = vsyncadd [#allocation4], 4294967040 }
 0x124   :  { %551 = dma.done.wait [#allocation10], 512  }
 0x125   :  { %552 = vsyncadd [#allocation10], 4294966784 }
 0x126   :  { %553 = dma.done.wait [#allocation13], 512  }
 0x127   :  { %554 = vsyncadd [#allocation13], 4294966784 }
 0x128   :  { %555 = dma.done.wait [#allocation16], 256  }
 0x129   :  { %556 = vsyncadd [#allocation16], 4294967040 }
 0x12a   :  { %281 = vsyncpa [#allocation3], 1 }
 0x12b   :  { %282 = vsyncpa [#allocation6], 1 }
 0x12c   :  { %283 = vsyncpa [#allocation4], 1 }
 0x12d   :  { %284 = vsyncpa [#allocation10], 1 }
 0x12e   :  { %285 = vsyncpa [#allocation13], 1 }
 0x12f   :  { %286 = vsyncpa [#allocation16], 1 }

// kernel: tpu_custom_call.1
= control target key start
LH: loop header
LB: loop body
LE: loop exit
PB: predicated region body
PF: predicated region fallthrough
CT: control target
= control target key end

     0   :  { %14 = vsyncpa [#allocation3], 0  ;;  %s689_s0 = inlined_call_operand.hbm [shape: bf16[16,32], index: 0, kind: input, shape index: {}]   ;;  %s690_s1 = inlined_call_operand.hbm [shape: bf16[32,192], index: 1, kind: input, shape index: {}]   ;;  %s691_s2 = inlined_call_operand.hbm [shape: f32[1,192], index: 2, kind: input, shape index: {}]   ;;  %s692_s3 = inlined_call_operand.hbm [shape: f32[16,32], index: 3, kind: output, shape index: {0}]   ;;  %s693_s4 = inlined_call_operand.hbm [shape: f32[16,32], index: 4, kind: output, shape index: {1}]   ;;  %s694_s5 = inlined_call_operand.hbm [shape: f32[16,32], index: 5, kind: output, shape index: {2}]   ;;  %s695_s6 = inlined_call_operand.hbm [shape: f32[16,32], index: 6, kind: output, shape index: {3}]   ;;  %s696_s7 = inlined_call_operand.hbm [shape: f32[16,32], index: 7, kind: output, shape index: {4}]   ;;  %s697_s8 = inlined_call_operand.hbm [shape: f32[16,32], index: 8, kind: output, shape index: {5}]  }
   0x1   :  { %15 = vsyncpa [#allocation6], 0 }
   0x2   :  { %16 = vsyncpa [#allocation4], 0 }
   0x3   :  { %17 = vsyncpa [#allocation10], 0 }
   0x4   :  { %18 = vsyncpa [#allocation13], 0  ;;  %s37_s29 = sshll.u32 %s690_s1, 4  ;;  %s38_s29 = int_to_ptr.hbm [resolvable:$true] %s37_s29 }
   0x5   :  { %19 = vsyncpa [#allocation16], 0  ;;  %s557_s30 = smov [#allocation5]   ;;  %s24_s12 = sshll.u32 %s689_s0, 4  ;;  %s25_s12 = int_to_ptr.hbm [resolvable:$true] %s24_s12 }
   0x6   :  { %s39_s9 = sshll.u32 %s557_s30, 4  ;;  %s558_s13 = smov 128   ;;  %s40_s9 = int_to_ptr.vmem [resolvable:$true] %s39_s9 }
   0x7   :  { %s559_s14 = smov 8   ;;  %s560_s15 = smov [#allocation2]  }
   0x8   :  { %45 = dma.hbm_to_vmem [thread:$0]  %s38_s29, 512, %s40_s9, [#allocation6], %s558_s13, %s558_s13, %s559_s14  }
   0x9   :  { %s26_s16 = sshll.u32 %s560_s15, 4  ;;  %s561_s1 = smov 64   ;;  %s27_s16 = int_to_ptr.vmem [resolvable:$true] %s26_s16 }
   0xa   :  { %s562_s17 = smov 4   ;;  %s51_s20 = sshll.u32 %s691_s2, 4  ;;  %s52_s20 = int_to_ptr.hbm [resolvable:$true] %s51_s20 }
   0xb   :  { %32 = dma.hbm_to_vmem [thread:$0]  %s25_s12, 128, %s27_s16, [#allocation3], %s561_s1, %s561_s1, %s562_s17  }
   0xc   :  { %s563_s0 = smov [#allocation7]  }
   0xd   :  { %s53_s21 = sshll.u32 %s563_s0, 4  ;;  %s54_s21 = int_to_ptr.vmem [resolvable:$true] %s53_s21 }
   0xe   :  { %56 = dma.hbm_to_vmem [thread:$0]  %s52_s20, 32, %s54_s21, [#allocation6]  }
   0xf   :  { %545 = dma.done.wait [#allocation3], 128  }
  0x10   :  { %546 = vsyncadd [#allocation3], 4294967168 }
  0x11   :  { %547 = dma.done.wait [#allocation6], 544  }
  0x12   :  { %548 = vsyncadd [#allocation6], 4294966752  ;;  %v301_v0 = vld [vmem:[#allocation5 + $0x10] sm:$0xf]  ;;  %v313_v1 = vld [vmem:[#allocation5 + $0x14] sm:$0xf0] }
  0x13   :  { %v312_v2 = vld [vmem:[#allocation5 + $0x14] sm:$0xf]  ;;  %v302_v3 = vor.u32 %v313_v1, %v301_v0  ;;  %v303_v4 = vld [vmem:[#allocation5 + $0x18] sm:$0xf0]  ;;  %v293_v5 = vld [vmem:[#allocation5] sm:$0xf] }
  0x14   :  { %v311_v6 = vld [vmem:[#allocation5 + $0x4] sm:$0xf0]  ;;  %v306_v7 = vor.u32 %v312_v2, %v303_v4  ;;  %v310_v8 = vld [vmem:[#allocation5 + $0x4] sm:$0xf]  ;;  %v295_v9 = vld [vmem:[#allocation5 + $0x8] sm:$0xf0] }
  0x15   :  { %117 = vmatpush.bf16.msra.mxu0 %v302_v3  ;;  %v294_v10 = vor.u32 %v311_v6, %v293_v5  ;;  %v298_v11 = vor.u32 %v310_v8, %v295_v9  ;;  %v309_v12 = vld [vmem:[#allocation2] sm:$0xff]  ;;  %vm107_vm0 = vcmask 261120   ;;  %v76_v13 = vld [vmem:[#allocation7] sm:$0x3]  ;;  %s564_s2 = smov 32   ;;  %s565_s22 = smov 96  }
  0x16   :  { %131 = vmatpush.bf16.msra.mxu1 %v306_v7  ;;  %v78_v14 = vperm.slane %v76_v13, 0  ;;  %v79_v15 = vperm.slane %v76_v13, 1  ;;  %s185_s25 = sshll.u32 %s692_s3, 4  ;;  %s566_s26 = smov [#allocation8]   ;;  %s186_s25 = int_to_ptr.hbm [resolvable:$true] %s185_s25 }
  0x17   :  { %s183_s27 = sshll.u32 %s566_s26, 4  ;;  %s567_s3 = smov [#allocation9]   ;;  %s184_s27 = int_to_ptr.vmem [resolvable:$true] %s183_s27 }
  0x18   :  { %s647_s28 = sshll.u32 %s567_s3, 4  ;;  %s198_s9 = sshll.u32 %s693_s4, 4  ;;  %s197_s28 = int_to_ptr.vmem [resolvable:$true] %s647_s28  ;;  %s199_s9 = int_to_ptr.hbm [resolvable:$true] %s198_s9 }
  0x19   :  { %118 = vmatpush.bf16.msra.mxu0 %v294_v10  ;;  %s568_s10 = smov [#allocation12]   ;;  %s224_s16 = sshll.u32 %s695_s6, 4  ;;  %s225_s16 = int_to_ptr.hbm [resolvable:$true] %s224_s16 }
  0x1a   :  { %132 = vmatpush.bf16.msra.mxu1 %v298_v11  ;;  %s652_s11 = sshll.u32 %s568_s10, 4  ;;  %s211_s19 = sshll.u32 %s694_s5, 4  ;;  %s223_s11 = int_to_ptr.vmem [resolvable:$true] %s652_s11  ;;  %s212_s19 = int_to_ptr.hbm [resolvable:$true] %s211_s19 }
  0x1b   :  { %s570_s20 = smov [#allocation14]   ;;  %s571_s6 = smov [#allocation15]  }
  0x1c   :  { %307 = vmatmul.msk.bf16.vlgmr.msra.gmra.mxu0 %vm107_vm0, %v309_v12  ;;  %s235_s0 = sshll.u32 %s570_s20, 4  ;;  %s248_s23 = sshll.u32 %s571_s6, 4  ;;  %s236_s0 = int_to_ptr.vmem [resolvable:$true] %s235_s0  ;;  %s249_s23 = int_to_ptr.vmem [resolvable:$true] %s248_s23 }
  0x1d   :  { %308 = vmatmul.msk.bf16.vlgmr.msra.gmra.mxu1 %vm107_vm0, %v309_v12  ;;  %s250_s5 = sshll.u32 %s697_s8, 4  ;;  %s251_s5 = int_to_ptr.hbm [resolvable:$true] %s250_s5 }
  0x99   :  { %v120_v16 = vpop.f32.mrf.mxu0 }
  0x9a   :  { %v121_v17 = vadd.f32 %v120_v16, %v78_v14  ;;  %v134_v18 = vpop.f32.mrf.mxu1 }
  0x9b   :  { %v135_v19 = vadd.f32 %v134_v18, %v79_v15 }
  0x9c   :  { %139 = vst.msk [vmem:[#allocation8] sm:$0xff] %vm107_vm0, %v121_v17  ;;  %151 = vrot.lane.b32.xlu2 %v121_v17, %s561_s1  ;;  %159 = vrot.lane.b32.xlu1 %v121_v17, %s564_s2 }
  0x9d   :  { %167 = vst.msk [vmem:[#allocation14] sm:$0xff] %vm107_vm0, %v135_v19  ;;  %143 = vrot.lane.b32.xlu0 %v121_v17, %s565_s22 }
  0xa1   :  { %v122_v20 = vpop.f32.mrf.mxu0 }
  0xa2   :  { %v123_v21 = vadd.f32 %v122_v20, %v78_v14  ;;  %v136_v22 = vpop.f32.mrf.mxu1 }
  0xa3   :  { %v137_v23 = vadd.f32 %v136_v22, %v79_v15 }
  0xa4   :  { %140 = vst.msk [vmem:[#allocation8 + $0x8] sm:$0xff] %vm107_vm0, %v123_v21  ;;  %153 = vrot.lane.b32.xlu2 %v123_v21, %s561_s1  ;;  %161 = vrot.lane.b32.xlu1 %v123_v21, %s564_s2  ;;  %s569_s1 = smov [#allocation11]  }
  0xa5   :  { %168 = vst.msk [vmem:[#allocation14 + $0x8] sm:$0xff] %vm107_vm0, %v137_v23  ;;  %145 = vrot.lane.b32.xlu0 %v123_v21, %s565_s22  ;;  %s209_s17 = sshll.u32 %s569_s1, 4  ;;  %s210_s17 = int_to_ptr.vmem [resolvable:$true] %s209_s17 }
  0xa6   :  { %191 = dma.vmem_to_hbm [thread:$0]  %s184_s27, 256, %s186_s25, [#allocation4], %s558_s13, %s558_s13, %s559_s14  }
  0xac   :  { %173 = vrot.lane.b32.xlu1 %v137_v23, %s565_s22 }
  0xad   :  { %171 = vrot.lane.b32.xlu0 %v135_v19, %s565_s22  ;;  %s237_s22 = sshll.u32 %s696_s7, 4  ;;  %s238_s22 = int_to_ptr.hbm [resolvable:$true] %s237_s22 }
  0xf6   :  { %v152_v24 = vpop.permute.xlu2 %151 }
  0xf7   :  { %157 = vst.msk [vmem:[#allocation11] sm:$0xff] %vm107_vm0, %v152_v24 }
  0xfe   :  { %v154_v25 = vpop.permute.xlu2 %153 }
  0xff   :  { %158 = vst.msk [vmem:[#allocation11 + $0x8] sm:$0xff] %vm107_vm0, %v154_v25 }
 0x10e   :  { %v160_v26 = vpop.permute.xlu1 %159 }
 0x10f   :  { %165 = vst.msk [vmem:[#allocation12] sm:$0xff] %vm107_vm0, %v160_v26  ;;  %v144_v27 = vpop.permute.xlu0 %143 }
 0x110   :  { %149 = vst.msk [vmem:[#allocation9] sm:$0xff] %vm107_vm0, %v144_v27 }
 0x116   :  { %v162_v28 = vpop.permute.xlu1 %161 }
 0x117   :  { %166 = vst.msk [vmem:[#allocation12 + $0x8] sm:$0xff] %vm107_vm0, %v162_v28  ;;  %v146_v29 = vpop.permute.xlu0 %145 }
 0x118   :  { %150 = vst.msk [vmem:[#allocation9 + $0x8] sm:$0xff] %vm107_vm0, %v146_v29  ;;  %230 = dma.vmem_to_hbm [thread:$0]  %s223_s11, 256, %s225_s16, [#allocation13], %s558_s13, %s558_s13, %s559_s14  }
 0x119   :  { %204 = dma.vmem_to_hbm [thread:$0]  %s197_s28, 256, %s199_s9, [#allocation10], %s558_s13, %s558_s13, %s559_s14  }
 0x11a   :  { %217 = dma.vmem_to_hbm [thread:$0]  %s210_s17, 256, %s212_s19, [#allocation10], %s558_s13, %s558_s13, %s559_s14  }
 0x11b   :  { %243 = dma.vmem_to_hbm [thread:$0]  %s236_s0, 256, %s238_s22, [#allocation13], %s558_s13, %s558_s13, %s559_s14  }
 0x11e   :  { %v174_v30 = vpop.permute.xlu1 %173 }
 0x11f   :  { %178 = vst.msk [vmem:[#allocation15 + $0x8] sm:$0xff] %vm107_vm0, %v174_v30  ;;  %v172_v31 = vpop.permute.xlu0 %171 }
 0x120   :  { %177 = vst.msk [vmem:[#allocation15] sm:$0xff] %vm107_vm0, %v172_v31 }
 0x121   :  { %256 = dma.vmem_to_hbm [thread:$0]  %s249_s23, 256, %s251_s5, [#allocation16], %s558_s13, %s558_s13, %s559_s14  }
 0x122   :  { %549 = dma.done.wait [#allocation4], 256  }
 0x123   :  { %550 = vsyncadd [#allocation4], 4294967040 }
 0x124   :  { %551 = dma.done.wait [#allocation10], 512  }
 0x125   :  { %552 = vsyncadd [#allocation10], 4294966784 }
 0x126   :  { %553 = dma.done.wait [#allocation13], 512  }
 0x127   :  { %554 = vsyncadd [#allocation13], 4294966784 }
 0x128   :  { %555 = dma.done.wait [#allocation16], 256  }
 0x129   :  { %556 = vsyncadd [#allocation16], 4294967040 }
 0x12a   :  { %281 = vsyncpa [#allocation3], 1 }
 0x12b   :  { %282 = vsyncpa [#allocation6], 1 }
 0x12c   :  { %283 = vsyncpa [#allocation4], 1 }
 0x12d   :  { %284 = vsyncpa [#allocation10], 1 }
 0x12e   :  { %285 = vsyncpa [#allocation13], 1 }
 0x12f   :  { %286 = vsyncpa [#allocation16], 1 }

</bundles_post_ra>
